<compile_context>
chip_gen: v7x
topology: tpu7x:2x2x1
jax: 0.10.0
libtpu: 0.0.40
codegen_flags: <defaults>
</compile_context>

<pallas_src>
import jax
import jax.numpy as jnp
from jax.experimental import pallas as pl
from jax.experimental.pallas import tpu as pltpu

EPS = 1e-5

_VMEM_LIMIT_CACHE = None


def _vmem_limit_bytes():
    """Generation-aware scoped-VMEM limit: ~half of physical VMEM
    (64 MiB on 128-MiB parts v5e/v6e, 32 MiB on 64-MiB v7x)."""
    global _VMEM_LIMIT_CACHE
    if _VMEM_LIMIT_CACHE is None:
        limit = 32 * 1024 * 1024  # safe on every current generation
        try:
            cap = int(pltpu.get_tpu_info().vmem_capacity_bytes)
            if cap >= 64 * 1024 * 1024:
                limit = min(cap // 2, 64 * 1024 * 1024)
        except Exception:
            pass
        _VMEM_LIMIT_CACHE = limit
    return _VMEM_LIMIT_CACHE


def _largest_divisor_leq(n, cap, step):
    """Largest multiple of `step` that divides n and is <= cap (None if none)."""
    cap = min(n, cap)
    best = None
    d = step
    while d <= cap:
        if n % d == 0:
            best = d
        d += step
    return best


def _plan_tiles(N, C, L, budget_bytes):
    """Pick an (Nt, Ct, Lt) block: as big as the budget allows, channel-tiled
    only when a single (C, 128) slab would not fit, lane tile a multiple of
    128 (ragged tail handled by a mask in the stats kernel)."""
    item = 4  # stats / compute in f32
    min_lane = min(L, 128)
    if C * min_lane * item <= budget_bytes:
        Ct = C
    else:
        Ct = _largest_divisor_leq(C, max(8, budget_bytes // (min_lane * item)), 8) or C
    lane_cap = max(128, budget_bytes // (Ct * item))
    Lt = L if L <= lane_cap else (lane_cap // 128) * 128
    n_cap = max(1, budget_bytes // (Ct * Lt * item))
    Nt = _largest_divisor_leq(N, n_cap, 1) or 1
    return Nt, Ct, Lt


# --------------------------- fused single pass ------------------------------


def _make_fused_kernel(m, eps):
    inv_m = 1.0 / float(m)

    def kernel(x_ref, gamma_ref, beta_ref, o_ref):
        # Whole x resident in VMEM: x_ref (N, C, L); gamma/beta (C, 1) f32.
        x = x_ref[...].astype(jnp.float32)
        s = jnp.sum(jnp.sum(x, axis=2, keepdims=True), axis=0, keepdims=True)
        mean = s * inv_m                                      # (1, C, 1)
        d = x - mean
        var = jnp.sum(jnp.sum(d * d, axis=2, keepdims=True),
                      axis=0, keepdims=True) * inv_m          # exact E[(x-mean)^2]
        scale = gamma_ref[...] * jax.lax.rsqrt(var + eps)     # (1, C, 1)
        o_ref[...] = (d * scale + beta_ref[...]).astype(o_ref.dtype)

    return kernel


# --------------------------- tiled two-pass path ----------------------------


def _make_stats_kernel(Lt, L):
    needs_mask = (L % Lt) != 0

    def kernel(x_ref, sum_ref, sumsq_ref):
        # x_ref: (Nt, Ct, Lt); sum/sumsq: (1, Ct, 1) per-(batch-block, L-tile)
        # partials (no accumulation -> every grid axis can be "parallel").
        x = x_ref[...].astype(jnp.float32)
        if needs_mask:
            valid = L - pl.program_id(2) * Lt
            lane = jax.lax.broadcasted_iota(jnp.int32, x.shape, 2)
            x = jnp.where(lane < valid, x, 0.0)
        sum_ref[...] = jnp.sum(jnp.sum(x, axis=2, keepdims=True),
                               axis=0, keepdims=True)
        sumsq_ref[...] = jnp.sum(jnp.sum(x * x, axis=2, keepdims=True),
                                 axis=0, keepdims=True)

    return kernel


def _norm_kernel(x_ref, scale_ref, shift_ref, o_ref):
    # x/o: (Nt, Ct, Lt); scale/shift: (Ct, 1) broadcast per channel along lanes.
    o_ref[...] = (x_ref[...] * scale_ref[...] + shift_ref[...]).astype(o_ref.dtype)


# --------------------------------- wrapper ----------------------------------


def batch_norm_1d(x, gamma, beta, eps=EPS, *, force_two_pass=False,
                  block_budget_bytes=None):
    """Training-mode BatchNorm1d forward (batch statistics), matching
    torch.nn.BatchNorm1d(num_features=C) on x of shape (N, C, L) or (N, C)."""
    if x.ndim == 2:
        return batch_norm_1d(x[:, :, None], gamma, beta, eps,
                             force_two_pass=force_two_pass,
                             block_budget_bytes=block_budget_bytes)[:, :, 0]

    N, C, L = x.shape
    vmem_limit = _vmem_limit_bytes()
    g = gamma.astype(jnp.float32).reshape(C, 1)
    b = beta.astype(jnp.float32).reshape(C, 1)

    # ---- fused single-pass fast path: whole x resident in VMEM ------------
    x_f32_bytes = N * C * L * 4
    if not force_two_pass and 5 * x_f32_bytes <= vmem_limit:
        return pl.pallas_call(
            _make_fused_kernel(N * L, eps),
            out_shape=jax.ShapeDtypeStruct((N, C, L), x.dtype),
            compiler_params=pltpu.CompilerParams(vmem_limit_bytes=vmem_limit),
        )(x, g, b)

    # ---- tiled two-pass path -----------------------------------------------
    if block_budget_bytes is None:
        # pass-2 peak ~ 2*(in block) + 2*(out block); keep it well under the limit.
        block_budget_bytes = max(256 * 1024, vmem_limit // 6)
    Nt, Ct, Lt = _plan_tiles(N, C, L, block_budget_bytes)
    n_nb, n_c, n_l = N // Nt, C // Ct, pl.cdiv(L, Lt)
    grid = (n_nb, n_c, n_l)

    # pass 1: per-tile partial per-channel sum / sum-of-squares
    psum, psumsq = pl.pallas_call(
        _make_stats_kernel(Lt, L),
        out_shape=(
            jax.ShapeDtypeStruct((n_nb * n_l, C, 1), jnp.float32),
            jax.ShapeDtypeStruct((n_nb * n_l, C, 1), jnp.float32),
        ),
        grid=grid,
        in_specs=[pl.BlockSpec((Nt, Ct, Lt), lambda nb, c, l: (nb, c, l))],
        out_specs=(
            pl.BlockSpec((1, Ct, 1), lambda nb, c, l: (nb * n_l + l, c, 0)),
            pl.BlockSpec((1, Ct, 1), lambda nb, c, l: (nb * n_l + l, c, 0)),
        ),
        compiler_params=pltpu.CompilerParams(
            dimension_semantics=("parallel", "parallel", "parallel"),
            vmem_limit_bytes=vmem_limit,
        ),
    )(x)

    # O(tiles*C) epilogue in the wrapper (trivial next to the HBM passes).
    m = jnp.float32(N * L)
    sums = jnp.sum(psum, axis=0)                        # (C, 1)
    sumsqs = jnp.sum(psumsq, axis=0)                    # (C, 1)
    mean = sums / m
    var = jnp.maximum(sumsqs / m - mean * mean, 0.0)    # biased var (torch BN)
    scale = g * jax.lax.rsqrt(var + eps)                # (C, 1)
    shift = b - mean * scale

    # pass 2: out = x * scale + shift
    out = pl.pallas_call(
        _norm_kernel,
        out_shape=jax.ShapeDtypeStruct((N, C, L), x.dtype),
        grid=grid,
        in_specs=[
            pl.BlockSpec((Nt, Ct, Lt), lambda nb, c, l: (nb, c, l)),
            pl.BlockSpec((Ct, 1), lambda nb, c, l: (c, 0)),
            pl.BlockSpec((Ct, 1), lambda nb, c, l: (c, 0)),
        ],
        out_specs=pl.BlockSpec((Nt, Ct, Lt), lambda nb, c, l: (nb, c, l)),
        compiler_params=pltpu.CompilerParams(
            dimension_semantics=("parallel", "parallel", "parallel"),
            vmem_limit_bytes=vmem_limit,
        ),
    )(x, scale, shift)
    return out


if __name__ == "__main__":
    key = jax.random.PRNGKey(0)
    kx, kg, kb, kx2 = jax.random.split(key, 4)

    def reference(x, gamma, beta, eps=EPS):
        mean = x.mean(axis=(0, 2), keepdims=True)
        var = ((x - mean) ** 2).mean(axis=(0, 2), keepdims=True)
        return ((x - mean) / jnp.sqrt(var + eps) * gamma[None, :, None]
                + beta[None, :, None])

    # Case 1: small input -> fused single-pass fast path.
    N, C, L = 4, 32, 128
    x = jax.random.normal(kx, (N, C, L), dtype=jnp.float32)
    gamma = 1.0 + 0.1 * jax.random.normal(kg, (C,), dtype=jnp.float32)
    beta = 0.1 * jax.random.normal(kb, (C,), dtype=jnp.float32)
    out = batch_norm_1d(x, gamma, beta)
    jax.block_until_ready(out)
    ref = reference(x, gamma, beta)
    assert jnp.allclose(out, ref, atol=2e-4, rtol=2e-4), float(jnp.abs(out - ref).max())

    # Case 2: same input through the tiled two-pass path.
    out2 = batch_norm_1d(x, gamma, beta, force_two_pass=True)
    jax.block_until_ready(out2)
    assert jnp.allclose(out2, ref, atol=2e-4, rtol=2e-4), float(jnp.abs(out2 - ref).max())

    # Case 3: ragged L (lane tile does not divide L) -> exercises the masked
    # stats tail and partial output stores of the tiled path.
    N3, C3, L3 = 4, 16, 320
    x3 = jax.random.normal(kx2, (N3, C3, L3), dtype=jnp.float32)
    g3 = jnp.ones((C3,), jnp.float32)
    b3 = jnp.zeros((C3,), jnp.float32)
    out3 = batch_norm_1d(x3, g3, b3, force_two_pass=True,
                         block_budget_bytes=16 * 1024)
    jax.block_until_ready(out3)
    ref3 = reference(x3, g3, b3)
    assert jnp.allclose(out3, ref3, atol=2e-4, rtol=2e-4), float(jnp.abs(out3 - ref3).max())

    print("KERNEL_OK")
</pallas_src>

<mosaic_0001>
module attributes {stable_mosaic.version = 11 : i64} {
  func.func @kernel(%arg0: memref<4x32x128xf32, #tpu.memory_space<vmem>>, %arg1: memref<32x1xf32, #tpu.memory_space<vmem>>, %arg2: memref<32x1xf32, #tpu.memory_space<vmem>>, %arg3: memref<4x32x128xf32, #tpu.memory_space<vmem>>) attributes {dimension_semantics = [], scalar_prefetch = 0 : i64, scratch_operands = 0 : i64, tpu.core_type = #tpu.core_type<tc>} {
    %c0 = arith.constant 0 : index
    %c0_0 = arith.constant 0 : index
    %c0_1 = arith.constant 0 : index
    %0 = vector.load %arg0[%c0, %c0_0, %c0_1] : memref<4x32x128xf32, #tpu.memory_space<vmem>>, vector<4x32x128xf32>
    %cst = arith.constant dense<0.000000e+00> : vector<4x32xf32>
    %1 = vector.multi_reduction <add>, %0, %cst [2] : vector<4x32x128xf32> to vector<4x32xf32>
    %2 = vector.shape_cast %1 : vector<4x32xf32> to vector<4x32x1xf32>
    %cst_2 = arith.constant dense<0.000000e+00> : vector<32x1xf32>
    %3 = vector.multi_reduction <add>, %2, %cst_2 [0] : vector<4x32x1xf32> to vector<32x1xf32>
    %4 = vector.shape_cast %3 : vector<32x1xf32> to vector<1x32x1xf32>
    %cst_3 = arith.constant 0.001953125 : f32
    %5 = vector.broadcast %cst_3 : f32 to vector<1x32x1xf32>
    %6 = arith.mulf %4, %5 : vector<1x32x1xf32>
    %7 = vector.broadcast %6 : vector<1x32x1xf32> to vector<4x32x128xf32>
    %8 = arith.subf %0, %7 : vector<4x32x128xf32>
    %9 = arith.mulf %8, %8 : vector<4x32x128xf32>
    %cst_4 = arith.constant dense<0.000000e+00> : vector<4x32xf32>
    %10 = vector.multi_reduction <add>, %9, %cst_4 [2] : vector<4x32x128xf32> to vector<4x32xf32>
    %11 = vector.shape_cast %10 : vector<4x32xf32> to vector<4x32x1xf32>
    %cst_5 = arith.constant dense<0.000000e+00> : vector<32x1xf32>
    %12 = vector.multi_reduction <add>, %11, %cst_5 [0] : vector<4x32x1xf32> to vector<32x1xf32>
    %13 = vector.shape_cast %12 : vector<32x1xf32> to vector<1x32x1xf32>
    %cst_6 = arith.constant 0.001953125 : f32
    %14 = vector.broadcast %cst_6 : f32 to vector<1x32x1xf32>
    %15 = arith.mulf %13, %14 : vector<1x32x1xf32>
    %c0_7 = arith.constant 0 : index
    %c0_8 = arith.constant 0 : index
    %16 = vector.load %arg1[%c0_7, %c0_8] : memref<32x1xf32, #tpu.memory_space<vmem>>, vector<32x1xf32>
    %cst_9 = arith.constant 9.99999974E-6 : f32
    %17 = vector.broadcast %cst_9 : f32 to vector<1x32x1xf32>
    %18 = arith.addf %15, %17 : vector<1x32x1xf32>
    %19 = math.rsqrt %18 : vector<1x32x1xf32>
    %20 = vector.shape_cast %16 : vector<32x1xf32> to vector<1x32x1xf32>
    %21 = arith.mulf %20, %19 : vector<1x32x1xf32>
    %22 = vector.broadcast %21 : vector<1x32x1xf32> to vector<4x32x128xf32>
    %23 = arith.mulf %8, %22 : vector<4x32x128xf32>
    %c0_10 = arith.constant 0 : index
    %c0_11 = arith.constant 0 : index
    %24 = vector.load %arg2[%c0_10, %c0_11] : memref<32x1xf32, #tpu.memory_space<vmem>>, vector<32x1xf32>
    %25 = vector.shape_cast %24 : vector<32x1xf32> to vector<1x32x1xf32>
    %26 = vector.broadcast %25 : vector<1x32x1xf32> to vector<4x32x128xf32>
    %27 = arith.addf %23, %26 : vector<4x32x128xf32>
    %c0_12 = arith.constant 0 : index
    %c0_13 = arith.constant 0 : index
    %c0_14 = arith.constant 0 : index
    %28 = vector.load %arg3[%c0_12, %c0_13, %c0_14] : memref<4x32x128xf32, #tpu.memory_space<vmem>>, vector<4x32x128xf32>
    tpu.vector_store %arg3[%c0_12, %c0_13, %c0_14], %27 {strides = array<i32>} : memref<4x32x128xf32, #tpu.memory_space<vmem>>, vector<4x32x128xf32>,
    return
  }
}

</mosaic_0001>

<bundles_post_ra>
// kernel: tpu_custom_call.1
= control target key start
LH: loop header
LB: loop body
LE: loop exit
PB: predicated region body
PF: predicated region fallthrough
CT: control target
= control target key end

     0   :  { %8 = vsyncpa [#allocation3], 0  ;;  %s576_s0 = inlined_call_operand.hbm [shape: f32[4,32,128], index: 0, kind: input, shape index: {}]   ;;  %s577_s1 = inlined_call_operand.vmem [shape: f32[32,1], index: 1, kind: input, shape index: {}]   ;;  %s578_s2 = inlined_call_operand.vmem [shape: f32[32,1], index: 2, kind: input, shape index: {}]   ;;  %s579_s3 = inlined_call_operand.hbm [shape: f32[4,32,128], index: 3, kind: output, shape index: {}]  }
   0x1   :  { %9 = vsyncpa [#allocation4], 0  ;;  %s361_s12 = smov [#allocation2]   ;;  %s313_s16 = scalar_lea.hbm %s576_s0, 2048 }
   0x2   :  { %s15_s13 = sshll.u32 %s361_s12, 4  ;;  %p314_p0 = scmp.ne.s32.totalorder %s576_s0, %s313_s16  ;;  %s16_s13 = int_to_ptr.vmem [resolvable:$true] %s15_s13 }
   0x3   :  { %p317_p1 = scmp.lt.u32.totalorder %s313_s16, %s576_s0 }
   0x5   :  { %p319_p2 = pnand %p317_p1, %p314_p0 }
   0x7   :  { %322 = shalt.err (!%p319_p2)
}
   0x8   :  { %s323_s21 = scalar_lea.vmem %s16_s13, 2048  ;;  %p328_p4 = scmp.lt.s32.totalorder %s16_s13, %s16_s13 }
   0x9   :  { %p324_p3 = scmp.ne.s32.totalorder %s16_s13, %s323_s21  ;;  %p329_p5 = scmp.lt.s32.totalorder %s323_s21, %s323_s21 }
   0xb   :  { %p330_p6 = por %p329_p5, %p328_p4 }
   0xd   :  { %p331_p7 = pnand %p330_p6, %p324_p3 }
   0xf   :  { %334 = shalt.err (!%p331_p7)
}
  0x10   :  { %s362_s22 = smov 128   ;;  %s363_s23 = smov 8  }
  0x11   :  { %21 = dma.hbm_to_vmem [thread:$0]  %s576_s0, 2048, %s16_s13, [#allocation3], %s362_s22, %s362_s22, %s363_s23  }
  0x12   :  { %357 = dma.done.wait [#allocation3], 2048  }
  0x13   :  { %358 = vsyncadd [#allocation3], 4294965248  ;;  %v401_v0 = vld [vmem:[#allocation2 + $0x10] sm:$0xff]  ;;  %v29_v1 = vld [vmem:[#allocation2] sm:$0xff] }
  0x14   :  { %49 = vadd.xlane.f32.xlu1 %v401_v0  ;;  %45 = vadd.xlane.f32.xlu0 %v29_v1  ;;  %v404_v2 = vld [vmem:[#allocation2 + $0x18] sm:$0xff]  ;;  %v30_v3 = vld [vmem:[#allocation2 + $0x8] sm:$0xff]  ;;  %v409_v5 = vld [vmem:[#allocation2 + $0x20] sm:$0xff] }
  0x15   :  { %v407_v4 = vld [vmem:[#allocation2 + $0x28] sm:$0xff]  ;;  %v413_v6 = vld [vmem:[#allocation2 + $0x38] sm:$0xff]  ;;  %v415_v7 = vld [vmem:[#allocation2 + $0x30] sm:$0xff] }
  0x16   :  { %v419_v8 = vld [vmem:[#allocation2 + $0x48] sm:$0xff]  ;;  %v421_v9 = vld [vmem:[#allocation2 + $0x40] sm:$0xff]  ;;  %v425_v10 = vld [vmem:[#allocation2 + $0x58] sm:$0xff] }
  0x17   :  { %v427_v11 = vld [vmem:[#allocation2 + $0x50] sm:$0xff]  ;;  %v431_v12 = vld [vmem:[#allocation2 + $0x68] sm:$0xff]  ;;  %v433_v13 = vld [vmem:[#allocation2 + $0x60] sm:$0xff] }
  0x18   :  { %51 = vadd.xlane.f32.xlu1 %v404_v2  ;;  %47 = vadd.xlane.f32.xlu0 %v30_v3  ;;  %v437_v14 = vld [vmem:[#allocation2 + $0x78] sm:$0xff]  ;;  %v439_v15 = vld [vmem:[#allocation2 + $0x70] sm:$0xff] }
  0x1c   :  { %55 = vadd.xlane.f32.xlu1 %v407_v4  ;;  %53 = vadd.xlane.f32.xlu0 %v409_v5 }
  0x20   :  { %59 = vadd.xlane.f32.xlu1 %v413_v6  ;;  %57 = vadd.xlane.f32.xlu0 %v415_v7 }
  0x24   :  { %63 = vadd.xlane.f32.xlu1 %v419_v8  ;;  %61 = vadd.xlane.f32.xlu0 %v421_v9 }
  0x28   :  { %67 = vadd.xlane.f32.xlu1 %v425_v10  ;;  %65 = vadd.xlane.f32.xlu0 %v427_v11 }
  0x2c   :  { %71 = vadd.xlane.f32.xlu1 %v431_v12  ;;  %69 = vadd.xlane.f32.xlu0 %v433_v13 }
  0x30   :  { %75 = vadd.xlane.f32.xlu1 %v437_v14  ;;  %73 = vadd.xlane.f32.xlu0 %v439_v15 }
  0xa1   :  { %v50_v16 = vpop.xlane.xlu1 %49  ;;  %v46_v17 = vpop.xlane.xlu0 %45 }
  0xa5   :  { %v52_v18 = vpop.xlane.xlu1 %51  ;;  %v48_v19 = vpop.xlane.xlu0 %47 }
  0xa9   :  { %v56_v20 = vpop.xlane.xlu1 %55  ;;  %v54_v21 = vpop.xlane.xlu0 %53 }
  0xaa   :  { %v80_v28 = vadd.f32 %v56_v20, %v48_v19  ;;  %v77_v29 = vadd.f32 %v54_v21, %v46_v17  ;;  %v227_v19 = vld [vmem:[%s578_s2 + $0x10] sm:$0xff] }
  0xad   :  { %v60_v22 = vpop.xlane.xlu1 %59  ;;  %v58_v23 = vpop.xlane.xlu0 %57 }
  0xae   :  { %v86_v34 = vadd.f32 %v60_v22, %v52_v18  ;;  %v83_v35 = vadd.f32 %v58_v23, %v50_v16  ;;  %v364_v18 = vmov 0  }
  0xaf   :  { %304 = vset.pattern.permute.xlu1 %v364_v18  ;;  %303 = vset.pattern.permute.xlu0 %v364_v18 }
  0xb1   :  { %v64_v24 = vpop.xlane.xlu1 %63  ;;  %v62_v25 = vpop.xlane.xlu0 %61 }
  0xb2   :  { %v81_v30 = vadd.f32 %v80_v28, %v64_v24  ;;  %v78_v31 = vadd.f32 %v77_v29, %v62_v25 }
  0xb5   :  { %v68_v26 = vpop.xlane.xlu1 %67  ;;  %v66_v27 = vpop.xlane.xlu0 %65 }
  0xb6   :  { %v87_v38 = vadd.f32 %v86_v34, %v68_v26  ;;  %v84_v39 = vadd.f32 %v83_v35, %v66_v27 }
  0xb9   :  { %v72_v32 = vpop.xlane.xlu1 %71  ;;  %v70_v33 = vpop.xlane.xlu0 %69 }
  0xba   :  { %v82_v36 = vadd.f32 %v81_v30, %v72_v32  ;;  %v79_v37 = vadd.f32 %v78_v31, %v70_v33 }
  0xbc   :  { %v90_v40 = vmul.f32 0.001953125, %v82_v36  ;;  %v89_v41 = vmul.f32 0.001953125, %v79_v37 }
  0xbd   :  { %v76_v42 = vpop.xlane.xlu1 %75  ;;  %v74_v43 = vpop.xlane.xlu0 %73 }
  0xbe   :  { %v88_v44 = vadd.f32 %v87_v38, %v76_v42  ;;  %v85_v45 = vadd.f32 %v84_v39, %v74_v43  ;;  %v443_v46 = vsub.f32 %v30_v3, %v90_v40  ;;  %v445_v47 = vsub.f32 %v29_v1, %v89_v41 }
  0xbf   :  { %v462_v56 = vsub.f32 %v407_v4, %v90_v40  ;;  %v465_v57 = vsub.f32 %v409_v5, %v89_v41  ;;  %v485_v1 = vsub.f32 %v421_v9, %v89_v41  ;;  %v505_v9 = vsub.f32 %v433_v13, %v89_v41 }
  0xc0   :  { %v92_v48 = vmul.f32 0.001953125, %v88_v44  ;;  %v91_v49 = vmul.f32 0.001953125, %v85_v45  ;;  %v110_v50 = vmul.f32 %v443_v46, %v443_v46  ;;  %v109_v51 = vmul.f32 %v445_v47, %v445_v47 }
  0xc1   :  { %v114_v58 = vmul.f32 %v462_v56, %v462_v56  ;;  %v113_v59 = vmul.f32 %v465_v57, %v465_v57  ;;  %v117_v3 = vmul.f32 %v485_v1, %v485_v1 }
  0xc2   :  { %127 = vadd.xlane.f32.xlu1 %v110_v50  ;;  %125 = vadd.xlane.f32.xlu0 %v109_v51  ;;  %v452_v52 = vsub.f32 %v404_v2, %v92_v48  ;;  %v455_v53 = vsub.f32 %v401_v0, %v91_v49  ;;  %v472_v60 = vsub.f32 %v413_v6, %v92_v48 }
  0xc3   :  { %v475_v61 = vsub.f32 %v415_v7, %v91_v49  ;;  %v482_v0 = vsub.f32 %v419_v8, %v90_v40  ;;  %v492_v4 = vsub.f32 %v425_v10, %v92_v48  ;;  %v495_v5 = vsub.f32 %v427_v11, %v91_v49 }
  0xc4   :  { %v112_v54 = vmul.f32 %v452_v52, %v452_v52  ;;  %v111_v55 = vmul.f32 %v455_v53, %v455_v53  ;;  %v116_v62 = vmul.f32 %v472_v60, %v472_v60  ;;  %v502_v8 = vsub.f32 %v431_v12, %v90_v40 }
  0xc5   :  { %v115_v63 = vmul.f32 %v475_v61, %v475_v61  ;;  %v118_v2 = vmul.f32 %v482_v0, %v482_v0  ;;  %v120_v6 = vmul.f32 %v492_v4, %v492_v4  ;;  %v119_v7 = vmul.f32 %v495_v5, %v495_v5 }
  0xc6   :  { %131 = vadd.xlane.f32.xlu1 %v112_v54  ;;  %129 = vadd.xlane.f32.xlu0 %v111_v55  ;;  %v122_v10 = vmul.f32 %v502_v8, %v502_v8  ;;  %v121_v11 = vmul.f32 %v505_v9, %v505_v9  ;;  %v512_v16 = vsub.f32 %v437_v14, %v92_v48  ;;  %v225_v14 = vld [vmem:[%s578_s2] sm:$0xff] }
  0xc7   :  { %v515_v17 = vsub.f32 %v439_v15, %v91_v49  ;;  %v226_v15 = vld [vmem:[%s578_s2 + $0x8] sm:$0xff] }
  0xc8   :  { %v124_v12 = vmul.f32 %v512_v16, %v512_v16 }
  0xc9   :  { %v123_v13 = vmul.f32 %v515_v17, %v515_v17 }
  0xca   :  { %135 = vadd.xlane.f32.xlu1 %v114_v58  ;;  %133 = vadd.xlane.f32.xlu0 %v113_v59 }
  0xce   :  { %139 = vadd.xlane.f32.xlu1 %v116_v62  ;;  %137 = vadd.xlane.f32.xlu0 %v115_v63 }
  0xd2   :  { %143 = vadd.xlane.f32.xlu1 %v118_v2  ;;  %141 = vadd.xlane.f32.xlu0 %v117_v3  ;;  %v174_v2 = vld [vmem:[%s577_s1 + $0x8] sm:$0xff]  ;;  %v173_v3 = vld [vmem:[%s577_s1] sm:$0xff] }
  0xd6   :  { %147 = vadd.xlane.f32.xlu1 %v120_v6  ;;  %145 = vadd.xlane.f32.xlu0 %v119_v7 }
  0xda   :  { %151 = vadd.xlane.f32.xlu1 %v122_v10  ;;  %149 = vadd.xlane.f32.xlu0 %v121_v11 }
  0xde   :  { %155 = vadd.xlane.f32.xlu1 %v124_v12  ;;  %153 = vadd.xlane.f32.xlu0 %v123_v13  ;;  %v175_v12 = vld [vmem:[%s577_s1 + $0x10] sm:$0xff] }
  0xef   :  { %231 = vperm.xlu1 %304, %v225_v14  }
  0xf3   :  { %236 = vperm.xlu1 %304, %v226_v15   ;;  %v176_v15 = vld [vmem:[%s577_s1 + $0x18] sm:$0xff]  ;;  %s365_s1 = smov [#allocation5]  }
  0xf7   :  { %241 = vperm.xlu1 %304, %v227_v19  }
 0x14f   :  { %v128_v20 = vpop.xlane.xlu1 %127  ;;  %v126_v21 = vpop.xlane.xlu0 %125 }
 0x153   :  { %v132_v22 = vpop.xlane.xlu1 %131  ;;  %v130_v23 = vpop.xlane.xlu0 %129 }
 0x157   :  { %v136_v24 = vpop.xlane.xlu1 %135  ;;  %v134_v25 = vpop.xlane.xlu0 %133 }
 0x158   :  { %v160_v32 = vadd.f32 %v136_v24, %v128_v20  ;;  %v157_v33 = vadd.f32 %v134_v25, %v126_v21  ;;  %v228_v20 = vld [vmem:[%s578_s2 + $0x18] sm:$0xff]  ;;  %s286_s2 = sshll.u32 %s365_s1, 4  ;;  %s287_s2 = int_to_ptr.vmem [resolvable:$true] %s286_s2 }
 0x159   :  { %s335_s14 = scalar_lea.vmem %s287_s2, 2048  ;;  %p340_p9 = scmp.lt.s32.totalorder %s287_s2, %s287_s2 }
 0x15a   :  { %p336_p8 = scmp.ne.s32.totalorder %s287_s2, %s335_s14  ;;  %p341_p10 = scmp.lt.s32.totalorder %s335_s14, %s335_s14 }
 0x15b   :  { %v140_v26 = vpop.xlane.xlu1 %139  ;;  %v138_v27 = vpop.xlane.xlu0 %137 }
 0x15c   :  { %v166_v38 = vadd.f32 %v140_v26, %v132_v22  ;;  %v163_v39 = vadd.f32 %v138_v27, %v130_v23  ;;  %p342_p11 = por %p341_p10, %p340_p9 }
 0x15e   :  { %p343_p12 = pnand %p342_p11, %p336_p8 }
 0x15f   :  { %v144_v28 = vpop.xlane.xlu1 %143  ;;  %v142_v29 = vpop.xlane.xlu0 %141 }
 0x160   :  { %v161_v34 = vadd.f32 %v160_v32, %v144_v28  ;;  %v158_v35 = vadd.f32 %v157_v33, %v142_v29 }
 0x163   :  { %v148_v30 = vpop.xlane.xlu1 %147  ;;  %v146_v31 = vpop.xlane.xlu0 %145 }
 0x164   :  { %v167_v42 = vadd.f32 %v166_v38, %v148_v30  ;;  %v164_v43 = vadd.f32 %v163_v39, %v146_v31 }
 0x167   :  { %v152_v36 = vpop.xlane.xlu1 %151  ;;  %v150_v37 = vpop.xlane.xlu0 %149 }
 0x168   :  { %v162_v40 = vadd.f32 %v161_v34, %v152_v36  ;;  %v159_v41 = vadd.f32 %v158_v35, %v150_v37 }
 0x16a   :  { %v170_v44 = vmul.f32 0.001953125, %v162_v40  ;;  %v169_v45 = vmul.f32 0.001953125, %v159_v41 }
 0x16b   :  { %v156_v48 = vpop.xlane.xlu1 %155  ;;  %v154_v49 = vpop.xlane.xlu0 %153 }
 0x16c   :  { %v178_v50 = vadd.f32 1e-05, %v170_v44  ;;  %v177_v51 = vadd.f32 1e-05, %v169_v45  ;;  %v168_v54 = vadd.f32 %v167_v42, %v156_v48  ;;  %v165_v55 = vadd.f32 %v164_v43, %v154_v49 }
 0x16e   :  { %305 = vrsqrt.f32 %v178_v50  ;;  %v172_v58 = vmul.f32 0.001953125, %v168_v54  ;;  %v171_v59 = vmul.f32 0.001953125, %v165_v55 }
 0x16f   :  { %307 = vrsqrt.f32 %v177_v51  ;;  %v232_v21 = vpop.permute.xlu1 %231 }
 0x170   :  { %v179_v62 = vadd.f32 1e-05, %v171_v59  ;;  %v180_v63 = vadd.f32 1e-05, %v172_v58 }
 0x172   :  { %309 = vrsqrt.f32 %v179_v62 }
 0x173   :  { %311 = vrsqrt.f32 %v180_v63  ;;  %v237_v22 = vpop.permute.xlu1 %236 }
 0x177   :  { %v242_v23 = vpop.permute.xlu1 %241 }
 0x178   :  { %v306_v6 = vpop.eup %305 }
 0x179   :  { %v308_v7 = vpop.eup %307  ;;  %v186_v10 = vmul.f32 %v306_v6, %v174_v2 }
 0x17a   :  { %v185_v11 = vmul.f32 %v308_v7, %v173_v3 }
 0x17b   :  { %196 = vperm.xlu1 %304, %v186_v10  }
 0x17c   :  { %191 = vperm.xlu0 %303, %v185_v11   ;;  %v310_v13 = vpop.eup %309 }
 0x17d   :  { %v187_v18 = vmul.f32 %v310_v13, %v175_v12  ;;  %v312_v14 = vpop.eup %311 }
 0x17e   :  { %v188_v19 = vmul.f32 %v312_v14, %v176_v15 }
 0x17f   :  { %201 = vperm.xlu1 %304, %v187_v18  }
 0x183   :  { %206 = vperm.xlu1 %304, %v188_v19  }
 0x187   :  { %246 = vperm.xlu1 %304, %v228_v20  }
 0x1fa   :  { %v197_v24 = vpop.permute.xlu1 %196 }
 0x1fb   :  { %v210_v25 = vmul.f32 %v197_v24, %v443_v46  ;;  %v214_v26 = vmul.f32 %v197_v24, %v462_v56  ;;  %v218_v27 = vmul.f32 %v197_v24, %v482_v0  ;;  %v222_v28 = vmul.f32 %v197_v24, %v502_v8  ;;  %v192_v29 = vpop.permute.xlu0 %191 }
 0x1fc   :  { %v209_v30 = vmul.f32 %v192_v29, %v445_v47  ;;  %v213_v31 = vmul.f32 %v192_v29, %v465_v57  ;;  %v217_v32 = vmul.f32 %v192_v29, %v485_v1  ;;  %v221_v33 = vmul.f32 %v192_v29, %v505_v9 }
 0x1fd   :  { %v250_v34 = vadd.f32 %v237_v22, %v210_v25  ;;  %v254_v35 = vadd.f32 %v237_v22, %v214_v26  ;;  %v258_v36 = vadd.f32 %v237_v22, %v218_v27  ;;  %v262_v37 = vadd.f32 %v237_v22, %v222_v28 }
 0x1fe   :  { %v249_v46 = vadd.f32 %v232_v21, %v209_v30  ;;  %v253_v38 = vadd.f32 %v232_v21, %v213_v31  ;;  %v257_v56 = vadd.f32 %v232_v21, %v217_v32  ;;  %v261_v39 = vadd.f32 %v232_v21, %v221_v33  ;;  %v202_v0 = vpop.permute.xlu1 %201 }
 0x1ff   :  { %266 = vst [vmem:[#allocation5 + $0x8] sm:$0xff] %v250_v34  ;;  %270 = vst [vmem:[#allocation5 + $0x28] sm:$0xff] %v254_v35  ;;  %v211_v47 = vmul.f32 %v202_v0, %v455_v53  ;;  %v215_v57 = vmul.f32 %v202_v0, %v475_v61  ;;  %v219_v1 = vmul.f32 %v202_v0, %v495_v5 }
 0x200   :  { %274 = vst [vmem:[#allocation5 + $0x48] sm:$0xff] %v258_v36  ;;  %278 = vst [vmem:[#allocation5 + $0x68] sm:$0xff] %v262_v37  ;;  %v223_v8 = vmul.f32 %v202_v0, %v515_v17 }
 0x201   :  { %265 = vst [vmem:[#allocation5] sm:$0xff] %v249_v46  ;;  %269 = vst [vmem:[#allocation5 + $0x20] sm:$0xff] %v253_v38  ;;  %v251_v9 = vadd.f32 %v242_v23, %v211_v47  ;;  %v255_v40 = vadd.f32 %v242_v23, %v215_v57  ;;  %v259_v41 = vadd.f32 %v242_v23, %v219_v1 }
 0x202   :  { %273 = vst [vmem:[#allocation5 + $0x40] sm:$0xff] %v257_v56  ;;  %277 = vst [vmem:[#allocation5 + $0x60] sm:$0xff] %v261_v39  ;;  %v263_v42 = vadd.f32 %v242_v23, %v223_v8  ;;  %v207_v43 = vpop.permute.xlu1 %206 }
 0x203   :  { %267 = vst [vmem:[#allocation5 + $0x10] sm:$0xff] %v251_v9  ;;  %271 = vst [vmem:[#allocation5 + $0x30] sm:$0xff] %v255_v40  ;;  %v212_v44 = vmul.f32 %v207_v43, %v452_v52  ;;  %v216_v53 = vmul.f32 %v207_v43, %v472_v60  ;;  %v220_v61 = vmul.f32 %v207_v43, %v492_v4 }
 0x204   :  { %275 = vst [vmem:[#allocation5 + $0x50] sm:$0xff] %v259_v41  ;;  %279 = vst [vmem:[#allocation5 + $0x70] sm:$0xff] %v263_v42  ;;  %v224_v5 = vmul.f32 %v207_v43, %v512_v16 }
 0x206   :  { %v247_v17 = vpop.permute.xlu1 %246 }
 0x207   :  { %v252_v45 = vadd.f32 %v247_v17, %v212_v44  ;;  %v256_v48 = vadd.f32 %v247_v17, %v216_v53  ;;  %v260_v49 = vadd.f32 %v247_v17, %v220_v61  ;;  %v264_v50 = vadd.f32 %v247_v17, %v224_v5 }
 0x209   :  { %268 = vst [vmem:[#allocation5 + $0x18] sm:$0xff] %v252_v45  ;;  %272 = vst [vmem:[#allocation5 + $0x38] sm:$0xff] %v256_v48 }
 0x20a   :  { %276 = vst [vmem:[#allocation5 + $0x58] sm:$0xff] %v260_v49  ;;  %280 = vst [vmem:[#allocation5 + $0x78] sm:$0xff] %v264_v50 }
 0x20b   :  { %346 = shalt.err (!%p343_p12)
}
 0x20c   :  { %s347_s17 = scalar_lea.hbm %s579_s3, 2048 }
 0x20d   :  { %p348_p13 = scmp.ne.s32.totalorder %s579_s3, %s347_s17  ;;  %p351_p0 = scmp.lt.u32.totalorder %s347_s17, %s579_s3 }
 0x20f   :  { %p353_p1 = pnand %p351_p0, %p348_p13 }
 0x211   :  { %356 = shalt.err (!%p353_p1)
}
 0x212   :  { %292 = dma.vmem_to_hbm [thread:$0]  %s287_s2, 2048, %s579_s3, [#allocation4], %s362_s22, %s362_s22, %s363_s23  }
 0x213   :  { %359 = dma.done.wait [#allocation4], 2048  }
 0x214   :  { %360 = vsyncadd [#allocation4], 4294965248 }
 0x215   :  { %296 = vsyncpa [#allocation3], 1 }
 0x216   :  { %297 = vsyncpa [#allocation4], 1 }

</bundles_post_ra>
